<compile_context>
chip_gen: v6e
topology: v6e:2x2x1
jax: 0.10.0
libtpu: 0.0.40
codegen_flags: <defaults>
</compile_context>

<pallas_src>
import functools

import jax
import jax.numpy as jnp
from jax.experimental import pallas as pl
from jax.experimental.pallas import tpu as pltpu


def _round_up(x: int, m: int) -> int:
    return (x + m - 1) // m * m


def _disc_kernel(xt_ref, w1_ref, w2_ref, b2_ref, w3_ref, b3_ref, o_ref, h2t_ref):
    # Grid: (batch tile i, nh1 chunk k).  Per step:
    #   xt_ref : [nin_p, tb]  bf16  (batch along lanes; includes the ones row)
    #   w1_ref : [ck, nin_p]  bf16  (b1 folded into the ones column)
    #   w2_ref : [nh2_p, ck]  bf16
    #   b2_ref : [nh2_p, 1]   f32
    #   w3_ref : [nh2_p, 1]   f32
    #   b3_ref : [1, 1]       f32   (SMEM scalar)
    #   o_ref  : [1, tb]      f32   (lane-dense output row)
    #   h2t_ref: [nh2_p, tb]  f32   VMEM accumulator (persists across k)
    k = pl.program_id(1)

    @pl.when(k == 0)
    def _init():
        h2t_ref[...] = jnp.zeros_like(h2t_ref)

    # Layer 1 chunk (full nin reduction inside the block -> ReLU is exact here).
    h1c = jnp.dot(w1_ref[...], xt_ref[...],
                  preferred_element_type=jnp.float32)          # [ck, tb] f32 (MXU)
    h1c = jnp.maximum(h1c, 0.0).astype(w2_ref.dtype)           # ReLU, bf16 for MXU
    # Layer 2 partial product, accumulated across chunks.
    h2t_ref[...] += jnp.dot(w2_ref[...], h1c,
                            preferred_element_type=jnp.float32)  # [nh2_p, tb]

    @pl.when(k == pl.num_programs(1) - 1)
    def _finalize():
        h2t = jnp.maximum(h2t_ref[...] + b2_ref[...], 0.0)      # bias + ReLU (VPU)
        # Layer 3 (nh2 -> 1): VPU multiply + sublane (XLU) reduce, lane-major.
        z = jnp.sum(h2t * w3_ref[...], axis=0, keepdims=True) + b3_ref[0, 0]
        o_ref[...] = (1.0 / (1.0 + jnp.exp(-z))).astype(o_ref.dtype)  # sigmoid (EUP)


def prepare_discriminator_params(w1, b1, w2, b2, w3, b3, *, ck=512):
    """Pad/cast weights once (hoisted out of the per-call forward path).

    w1 : [nh1, nin] (PyTorch nn.Linear layout), b1 : [nh1]
    w2 : [nh2, nh1],                            b2 : [nh2]
    w3 : [1, nh2],                              b3 : [1]
    Returns (w1a, w2p, b2p, w3p, b3p, ck) with b1 folded into w1a's extra
    'ones' input column and all matmul operands in bf16.
    """
    nh1, nin = w1.shape
    nh2 = w2.shape[0]
    assert w2.shape == (nh2, nh1) and w3.shape == (1, nh2)

    ck = min(ck, _round_up(nh1, 128))      # don't over-pad tiny nh1
    nin_p = _round_up(nin + 1, 128)        # +1: ones column carries b1
    nh1_p = _round_up(nh1, ck)             # chunk axis exact
    nh2_p = _round_up(nh2, 64)             # 64 (not 128): halves h2 accum/reduce

    f32, bf16 = jnp.float32, jnp.bfloat16
    w1a = jnp.concatenate([w1.astype(f32), b1.reshape(nh1, 1).astype(f32)], axis=1)
    w1a = jnp.pad(w1a, ((0, nh1_p - nh1), (0, nin_p - (nin + 1)))).astype(bf16)
    w2p = jnp.pad(w2.astype(f32), ((0, nh2_p - nh2), (0, nh1_p - nh1))).astype(bf16)
    b2p = jnp.pad(b2.reshape(-1).astype(f32), (0, nh2_p - nh2)).reshape(nh2_p, 1)
    w3p = jnp.pad(w3.reshape(-1).astype(f32), (0, nh2_p - nh2)).reshape(nh2_p, 1)
    b3p = b3.reshape(1, 1).astype(f32)
    return w1a, w2p, b2p, w3p, b3p, ck


@functools.partial(jax.jit, static_argnames=("ck", "tb"))
def discriminator_forward(x, w1a, w2p, b2p, w3p, b3p, *, ck, tb=None):
    """Fused forward pass.  x: [B, nin] f32 -> [B, 1] f32 in (0, 1)."""
    B, nin = x.shape
    nh1_p, nin_p = w1a.shape
    nh2_p = w2p.shape[0]
    assert nin + 1 <= nin_p and w2p.shape == (nh2_p, nh1_p) and nh1_p % ck == 0

    if tb is None:
        # >=2 batch steps for small/medium B (keeps both v7x TCs busy and avoids
        # fully-padded lanes for tiny B); 256 for large B.  Pass tb=512 on v6e
        # for very large B if desired.
        tb = 128 if B <= 512 else 256
        tb = min(tb, _round_up(B, 128))
    b_p = _round_up(B, tb)
    grid = (b_p // tb, nh1_p // ck)

    f32, bf16 = jnp.float32, jnp.bfloat16
    # Cast to bf16 BEFORE pad/transpose (halves the data-movement bytes);
    # the appended ones column folds b1 into the layer-1 matmul.
    x_aug = jnp.concatenate([x.astype(bf16), jnp.ones((B, 1), bf16)], axis=1)
    xt = jnp.pad(x_aug, ((0, b_p - B), (0, nin_p - (nin + 1)))).T   # [nin_p, b_p]

    flops = 2 * b_p * (nin_p * nh1_p + nh1_p * nh2_p + nh2_p)
    bytes_accessed = (xt.size * 2
                      + (w1a.size + w2p.size) * 2 * grid[0]   # weights streamed per batch tile
                      + (b2p.size + w3p.size + 1) * 4
                      + b_p * 4)

    out = pl.pallas_call(
        _disc_kernel,
        out_shape=jax.ShapeDtypeStruct((1, b_p), f32),
        grid=grid,
        in_specs=[
            pl.BlockSpec((nin_p, tb), lambda i, k: (0, i)),     # x^T batch tile
            pl.BlockSpec((ck, nin_p), lambda i, k: (k, 0)),     # w1 chunk (streamed)
            pl.BlockSpec((nh2_p, ck), lambda i, k: (0, k)),     # w2 chunk (streamed)
            pl.BlockSpec((nh2_p, 1), lambda i, k: (0, 0)),      # b2 column
            pl.BlockSpec((nh2_p, 1), lambda i, k: (0, 0)),      # w3 column
            pl.BlockSpec(memory_space=pltpu.MemorySpace.SMEM),  # b3 scalar
        ],
        out_specs=pl.BlockSpec((1, tb), lambda i, k: (0, i)),   # lane-dense output row
        scratch_shapes=[pltpu.VMEM((nh2_p, tb), jnp.float32)],  # h2^T accumulator
        compiler_params=pltpu.CompilerParams(
            dimension_semantics=("parallel", "arbitrary"),
        ),
        cost_estimate=pl.CostEstimate(
            flops=flops, transcendentals=b_p, bytes_accessed=bytes_accessed),
    )(xt, w1a, w2p, b2p, w3p, b3p)

    return out[0, :B].reshape(B, 1)


def _init_linear(key, fan_in, fan_out):
    """Mimics torch.nn.Linear default init: U(-1/sqrt(fan_in), 1/sqrt(fan_in)).
    Weight returned in PyTorch layout [out, in], bias [out]."""
    kw, kb = jax.random.split(key)
    bound = 1.0 / jnp.sqrt(jnp.float32(fan_in))
    w = jax.random.uniform(kw, (fan_out, fan_in), jnp.float32, -bound, bound)
    b = jax.random.uniform(kb, (fan_out,), jnp.float32, -bound, bound)
    return w, b


def _reference_forward(x, w1, b1, w2, b2, w3, b3):
    h1 = jnp.maximum(x @ w1.T + b1, 0.0)
    h2 = jnp.maximum(h1 @ w2.T + b2, 0.0)
    return jax.nn.sigmoid(h2 @ w3.T + b3)


if __name__ == "__main__":
    # Small shapes consistent with the module structure (nin, nh1=5*nin, nh2, out=1).
    # Original module uses nin=784, nh1=3920, nh2=40; scaled down here.
    # ck=128 so the demo exercises a multi-step reduction grid axis (3 chunks).
    B, nin, nh1, nh2 = 8, 64, 320, 40

    key = jax.random.PRNGKey(0)
    kx, k1, k2, k3 = jax.random.split(key, 4)

    x = jax.random.normal(kx, (B, nin), jnp.float32)
    w1, b1 = _init_linear(k1, nin, nh1)
    w2, b2 = _init_linear(k2, nh1, nh2)
    w3, b3 = _init_linear(k3, nh2, 1)

    # Weight prep is done ONCE (not per forward call).
    w1a, w2p, b2p, w3p, b3p, ck = prepare_discriminator_params(
        w1, b1, w2, b2, w3, b3, ck=128)

    out = discriminator_forward(x, w1a, w2p, b2p, w3p, b3p, ck=ck)
    out = jax.block_until_ready(out)

    ref = _reference_forward(x, w1, b1, w2, b2, w3, b3)
    assert out.shape == (B, 1)
    # bf16 matmul inputs (incl. folded b1) with f32 accumulation -> bf16-class
    # tolerance vs the f32 reference.
    assert jnp.allclose(out, ref, atol=2e-2, rtol=2e-2), "mismatch vs JAX reference"

    print("KERNEL_OK")
</pallas_src>

<mosaic_0001>
module attributes {stable_mosaic.version = 11 : i64} {
  func.func @_disc_kernel(%arg0: i32, %arg1: i32, %arg2: memref<128x128xbf16, #tpu.memory_space<vmem>>, %arg3: memref<128x128xbf16, #tpu.memory_space<vmem>>, %arg4: memref<64x128xbf16, #tpu.memory_space<vmem>>, %arg5: memref<64x1xf32, #tpu.memory_space<vmem>>, %arg6: memref<64x1xf32, #tpu.memory_space<vmem>>, %arg7: memref<1x1xf32, #tpu.memory_space<smem>>, %arg8: memref<1x128xf32, #tpu.memory_space<vmem>>, %arg9: memref<64x128xf32, #tpu.memory_space<vmem>>) attributes {dimension_semantics = [#tpu.dimension_semantics<parallel>, #tpu.dimension_semantics<arbitrary>], iteration_bounds = array<i64: 1, 3>, scalar_prefetch = 0 : i64, scratch_operands = 1 : i64, tpu.core_type = #tpu.core_type<tc>, window_params = [{transform_indices = @transform_0, window_bounds = array<i64: 128, 128>}, {transform_indices = @transform_1, window_bounds = array<i64: 128, 128>}, {transform_indices = @transform_2, window_bounds = array<i64: 64, 128>}, {pipeline_mode = #tpu.pipeline_mode<synchronous>, transform_indices = @transform_3, window_bounds = array<i64: 64, 1>}, {pipeline_mode = #tpu.pipeline_mode<synchronous>, transform_indices = @transform_4, window_bounds = array<i64: 64, 1>}, {transform_indices = @transform_5, window_bounds = array<i64: 1, 1>}, {transform_indices = @transform_6, window_bounds = array<i64: 1, 128>}]} {
    %c0_i32 = arith.constant 0 : i32
    %0 = arith.cmpi eq, %arg1, %c0_i32 : i32
    %1 = arith.extui %0 : i1 to i32
    %c0_i32_0 = arith.constant 0 : i32
    %2 = arith.cmpi ne, %1, %c0_i32_0 : i32
    scf.if %2 {
      %cst_13 = arith.constant 0.000000e+00 : f32
      %17 = vector.broadcast %cst_13 : f32 to vector<64x128xf32>
      %c0_14 = arith.constant 0 : index
      %c0_15 = arith.constant 0 : index
      %18 = vector.load %arg9[%c0_14, %c0_15] : memref<64x128xf32, #tpu.memory_space<vmem>>, vector<64x128xf32>
      tpu.vector_store %arg9[%c0_14, %c0_15], %17 {strides = array<i32>} : memref<64x128xf32, #tpu.memory_space<vmem>>, vector<64x128xf32>,
    } else {
    }
    %c0 = arith.constant 0 : index
    %c0_1 = arith.constant 0 : index
    %3 = vector.load %arg3[%c0, %c0_1] : memref<128x128xbf16, #tpu.memory_space<vmem>>, vector<128x128xbf16>
    %c0_2 = arith.constant 0 : index
    %c0_3 = arith.constant 0 : index
    %4 = vector.load %arg2[%c0_2, %c0_3] : memref<128x128xbf16, #tpu.memory_space<vmem>>, vector<128x128xbf16>
    %cst = arith.constant dense<0.000000e+00> : vector<128x128xf32>
    %5 = tpu.matmul %3, %4, %cst {dimension_numbers = #tpu.dot_dimension_numbers<[1], [0], [0], [1], [0, 0, 1, 1], [], []>} : vector<128x128xbf16>, vector<128x128xbf16>, vector<128x128xf32> -> vector<128x128xf32>
    %cst_4 = arith.constant 0.000000e+00 : f32
    %6 = vector.broadcast %cst_4 : f32 to vector<128x128xf32>
    %7 = arith.maximumf %5, %6 : vector<128x128xf32>
    %8 = arith.truncf %7 : vector<128x128xf32> to vector<128x128xbf16>
    %c0_5 = arith.constant 0 : index
    %c0_6 = arith.constant 0 : index
    %9 = vector.load %arg9[%c0_5, %c0_6] : memref<64x128xf32, #tpu.memory_space<vmem>>, vector<64x128xf32>
    %c0_7 = arith.constant 0 : index
    %c0_8 = arith.constant 0 : index
    %10 = vector.load %arg4[%c0_7, %c0_8] : memref<64x128xbf16, #tpu.memory_space<vmem>>, vector<64x128xbf16>
    %cst_9 = arith.constant dense<0.000000e+00> : vector<64x128xf32>
    %11 = tpu.matmul %10, %8, %cst_9 {dimension_numbers = #tpu.dot_dimension_numbers<[1], [0], [0], [1], [0, 0, 1, 1], [], []>} : vector<64x128xbf16>, vector<128x128xbf16>, vector<64x128xf32> -> vector<64x128xf32>
    %12 = arith.addf %9, %11 : vector<64x128xf32>
    %c0_10 = arith.constant 0 : index
    %c0_11 = arith.constant 0 : index
    %13 = vector.load %arg9[%c0_10, %c0_11] : memref<64x128xf32, #tpu.memory_space<vmem>>, vector<64x128xf32>
    tpu.vector_store %arg9[%c0_10, %c0_11], %12 {strides = array<i32>} : memref<64x128xf32, #tpu.memory_space<vmem>>, vector<64x128xf32>,
    %c2_i32 = arith.constant 2 : i32
    %14 = arith.cmpi eq, %arg1, %c2_i32 : i32
    %15 = arith.extui %14 : i1 to i32
    %c0_i32_12 = arith.constant 0 : i32
    %16 = arith.cmpi ne, %15, %c0_i32_12 : i32
    scf.if %16 {
      %c0_13 = arith.constant 0 : index
      %c0_14 = arith.constant 0 : index
      %17 = vector.load %arg9[%c0_13, %c0_14] : memref<64x128xf32, #tpu.memory_space<vmem>>, vector<64x128xf32>
      %c0_15 = arith.constant 0 : index
      %c0_16 = arith.constant 0 : index
      %18 = vector.load %arg5[%c0_15, %c0_16] : memref<64x1xf32, #tpu.memory_space<vmem>>, vector<64x1xf32>
      %19 = vector.broadcast %18 : vector<64x1xf32> to vector<64x128xf32>
      %20 = arith.addf %17, %19 : vector<64x128xf32>
      %cst_17 = arith.constant 0.000000e+00 : f32
      %21 = vector.broadcast %cst_17 : f32 to vector<64x128xf32>
      %22 = arith.maximumf %20, %21 : vector<64x128xf32>
      %c0_18 = arith.constant 0 : index
      %c0_19 = arith.constant 0 : index
      %23 = vector.load %arg6[%c0_18, %c0_19] : memref<64x1xf32, #tpu.memory_space<vmem>>, vector<64x1xf32>
      %24 = vector.broadcast %23 : vector<64x1xf32> to vector<64x128xf32>
      %25 = arith.mulf %22, %24 : vector<64x128xf32>
      %cst_20 = arith.constant dense<0.000000e+00> : vector<128xf32>
      %26 = vector.multi_reduction <add>, %25, %cst_20 [0] : vector<64x128xf32> to vector<128xf32>
      %27 = vector.shape_cast %26 : vector<128xf32> to vector<1x128xf32>
      %c0_21 = arith.constant 0 : index
      %c0_22 = arith.constant 0 : index
      %28 = memref.load %arg7[%c0_21, %c0_22] : memref<1x1xf32, #tpu.memory_space<smem>>
      %29 = vector.broadcast %28 : f32 to vector<1x128xf32>
      %30 = arith.addf %27, %29 : vector<1x128xf32>
      %cst_23 = arith.constant 0.000000e+00 : f32
      %31 = vector.broadcast %cst_23 : f32 to vector<1x128xf32>
      %32 = arith.subf %31, %30 : vector<1x128xf32>
      %33 = math.exp %32 : vector<1x128xf32>
      %cst_24 = arith.constant 1.000000e+00 : f32
      %34 = vector.broadcast %cst_24 : f32 to vector<1x128xf32>
      %35 = arith.addf %34, %33 : vector<1x128xf32>
      %cst_25 = arith.constant 1.000000e+00 : f32
      %36 = vector.broadcast %cst_25 : f32 to vector<1x128xf32>
      %37 = arith.divf %36, %35 : vector<1x128xf32>
      %c0_26 = arith.constant 0 : index
      %c0_27 = arith.constant 0 : index
      %38 = vector.load %arg8[%c0_26, %c0_27] : memref<1x128xf32, #tpu.memory_space<vmem>>, vector<1x128xf32>
      tpu.vector_store %arg8[%c0_26, %c0_27], %37 {strides = array<i32>} : memref<1x128xf32, #tpu.memory_space<vmem>>, vector<1x128xf32>,
    } else {
    }
    return
  }
  func.func @transform_0(%arg0: i32, %arg1: i32) -> (i32, i32) {
    %c0_i32 = arith.constant 0 : i32
    %c0_i32_0 = arith.constant 0 : i32
    return %c0_i32, %arg0 : i32, i32
  }
  func.func @transform_1(%arg0: i32, %arg1: i32) -> (i32, i32) {
    %c0_i32 = arith.constant 0 : i32
    %c0_i32_0 = arith.constant 0 : i32
    return %arg1, %c0_i32 : i32, i32
  }
  func.func @transform_2(%arg0: i32, %arg1: i32) -> (i32, i32) {
    %c0_i32 = arith.constant 0 : i32
    %c0_i32_0 = arith.constant 0 : i32
    return %c0_i32, %arg1 : i32, i32
  }
  func.func @transform_3(%arg0: i32, %arg1: i32) -> (i32, i32) {
    %c0_i32 = arith.constant 0 : i32
    %c0_i32_0 = arith.constant 0 : i32
    %c0_i32_1 = arith.constant 0 : i32
    return %c0_i32, %c0_i32_0 : i32, i32
  }
  func.func @transform_4(%arg0: i32, %arg1: i32) -> (i32, i32) {
    %c0_i32 = arith.constant 0 : i32
    %c0_i32_0 = arith.constant 0 : i32
    %c0_i32_1 = arith.constant 0 : i32
    return %c0_i32, %c0_i32_0 : i32, i32
  }
  func.func @transform_5(%arg0: i32, %arg1: i32) -> (i32, i32) {
    %c0_i32 = arith.constant 0 : i32
    %c0_i32_0 = arith.constant 0 : i32
    %c0_i32_1 = arith.constant 0 : i32
    return %c0_i32, %c0_i32_0 : i32, i32
  }
  func.func @transform_6(%arg0: i32, %arg1: i32) -> (i32, i32) {
    %c0_i32 = arith.constant 0 : i32
    %c0_i32_0 = arith.constant 0 : i32
    return %c0_i32, %arg0 : i32, i32
  }
}

</mosaic_0001>

<bundles_post_ra>
// kernel: discriminator_forward.1
= control target key start
LH: loop header
LB: loop body
LE: loop exit
PB: predicated region body
PF: predicated region fallthrough
CT: control target
= control target key end

     0   :  { %s1467_s0 = inlined_call_operand.vmem [shape: bf16[128,128], index: 0, kind: input, shape index: {}]   ;;  %s1468_s1 = inlined_call_operand.vmem [shape: bf16[384,128], index: 1, kind: input, shape index: {}]   ;;  %s1469_s2 = inlined_call_operand.hbm [shape: bf16[64,384], index: 2, kind: input, shape index: {}]   ;;  %s1470_s3 = inlined_call_operand.vmem [shape: f32[64,1], index: 3, kind: input, shape index: {}]   ;;  %s1471_s4 = inlined_call_operand.vmem [shape: f32[64,1], index: 4, kind: input, shape index: {}]   ;;  %s1472_s5 = inlined_call_operand.<no memory space> [shape: f32[1,1], index: 5, kind: input, shape index: {}]   ;;  %s1473_s6 = inlined_call_operand.vmem [shape: f32[1,128], index: 6, kind: output, shape index: {}]  }
   0x1   :  { %11 = sst [smem:[#allocation3]] %s1472_s5 }
   0x2   :  { %12 = vsyncpa [#allocation5], 0 }
   0x3   :  { %14 = vsyncpa [#allocation5 + $0x1], 0  ;;  %s1277_s23 = smov 0   ;;  %s1279_s24 = smov 0  }
   0x4   :  { %s1281_s25 = smov 0   ;;  %s1283_s26 = smov 0  }
   0x5   :  { %s1285_s27 = smov 0   ;;  %s1287_s28 = smov 0  }
   0x6 LB: > { %s948_s5 = sadd.s32 4294967295, %s1231_s28   ;;  %s29_s29 = sadd.s32 1, %s1227_s27  ;;  %s1231_s28 = sphi %s1287_s28, %s20_s28   ;;  %s1227_s27 = sphi %s1285_s27, %s1481_s27   ;;  %s1223_s26 = sphi %s1283_s26, %s1480_s26   ;;  %s1219_s25 = sphi %s1281_s25, %s1479_s25   ;;  %s1215_s24 = sphi %s1279_s24, %s1478_s24   ;;  %s1211_s23 = sphi %s1277_s23, %s1477_s23  }
   0x7   : > { %p30_p0 = scmp.ge.s32.totalorder %s29_s29, 3  ;;  %s91_s30 = sadd.s32 1, %s1219_s25 }
   0x8   : > { %p98_p1 = scmp.ne.s32.totalorder %s1219_s25, %s1215_s24  ;;  %p99_p2 = scmp.eq.s32.totalorder %s1231_s28, 0 }
   0x9   : > { %s1483_s29 = smov (%p30_p0, %s29_s29), 0  ;;  %p104_p4 = scmp.ne.s32.totalorder %s1215_s24, %s1211_s23 }
   0xa   : > { %p1313_p3 = por %p99_p2, %p98_p1  ;;  %s88_s8 = ssub.s32 %s1227_s27, %s1483_s29 }
   0xb   : > { %p105_p5 = scmp.eq.s32.totalorder %s948_s5, 0  ;;  %p89_p6 = scmp.eq.s32.totalorder %s88_s8, 0 }
   0xc   : > { %p1073_p8 = scmp.lt.s32.totalorder %s1231_s28, 3  ;;  %s242_s11 = sand.u32 1, %s1219_s25  }
   0xd   : > { %p1320_p7 = por %p105_p5, %p104_p4  ;;  %s953_s12 = sshll.u32 %s1227_s27, 6 }
   0xe   : > { %s1326_s10 = scalar_select %p89_p6, %s1219_s25, %s91_s30  }
   0xf   : > { %s952_s13 = sshll.u32 %s242_s11, 5  ;;  %s251_s16 = scalar_lea.hbm %s1469_s2, %s953_s12 }
  0x10   : > { %s246_s17 = scalar_lea.vmem [#allocation4], %s952_s13  ;;  %p1335_p9 = pnand %p1073_p8, %p1313_p3 }
  0x11   : > { %s252_s18 = sshll.u32 %s246_s17, 4  ;;  %p954_p10 = scmp.ge.s32.totalorder %s1231_s28, 1  ;;  %s253_s18 = int_to_ptr.vmem [resolvable:$true] %s252_s18 }
  0x12   : > { %s243_s20 = scalar_lea.sflag [#allocation5], %s242_s11  ;;  %p1155_p11 = pneg %p1335_p9 }
  0x13   : > { %s1166_s21 = scalar_lea.vmem %s253_s18, 512  ;;  %s1233_s22 = smov [#allocation4]  }
  0x14   : > { %p1167_p12 = scmp.ne.s32.totalorder %s253_s18, %s1166_s21  ;;  %s1171_s23 = sshll.u32 %s1233_s22, 4  ;;  %s1172_s23 = int_to_ptr.vmem [resolvable:$false] %s1171_s23 }
  0x15   : > { %s1173_s5 = scalar_lea.vmem %s1172_s23, 1024  ;;  %p1174_p1 = scmp.lt.s32.totalorder %s253_s18, %s1172_s23 }
  0x16   : > { %p1169_p13 = pnand %p1167_p12, %p1155_p11  ;;  %p1175_p2 = scmp.lt.s32.totalorder %s1173_s5, %s1166_s21 }
  0x18   : > { %p1170_p0 = pneg %p1169_p13  ;;  %p1176_p3 = por %p1175_p2, %p1174_p1 }
  0x1a   : > { %p1177_p4 = pnand %p1176_p3, %p1170_p0 }
  0x1c   : > { %1180 = shalt.err (!%p1177_p4)
}
  0x1d   : > { %s1234_s30 = smov 192   ;;  %s1235_s7 = smov 64  }
  0x1e   : > { %s1236_s8 = smov 4   ;;  %p260_p5 = scmp.lt.s32.totalorder %s1231_s28, 4 }
  0x1f   : > { %1072 = dma.hbm_to_vmem [thread:$0]  (!%p1335_p9), %s251_s16, 512, %s253_s18, %s243_s20, %s1234_s30, %s1235_s7, %s1236_s8  }
  0x20   : > { %p261_p6 = pnand %p954_p10, %p260_p5 }
  0x21   : > { %s266_s11 = sand.u32 (!%p261_p6), 1, %s1215_s24  }
  0x22   : > { %264 = sbr.rel (%p261_p6) target bundleno = 761 (0x2f9), region = 44  ;;  %s955_s12 = sshll.u32 (!%p261_p6), %s266_s11, 5 }
  0x23   : > { %s267_s13 = scalar_lea.sflag (!%p261_p6), [#allocation5], %s266_s11  ;;  %s1348_s14 = scalar_lea.vmem (!%p261_p6), [#allocation4], %s955_s12 }
  0x27   : > { %1206 = dma.done.wait (%p1320_p7), %s267_s13, 512  }
  0x28   : > { %1208 = vsyncadd (%p1320_p7), %s267_s13, 4294966784  ;;  %s956_s15 = sshll.u32 %s1223_s26, 4  ;;  %p958_p9 = scmp.ne.s32.totalorder %s1223_s26, 0 }
  0x29   : > { %p311_p8 = scmp.lt.s32.totalorder %s956_s15, 47 }
  0x2a   : > { %323 = sbr.rel (%p958_p9) target bundleno = 52 (0x34), region = 52 }
  0x2b   : > { %s1485_s15 = smov (!%p311_p8, %s956_s15), 47 }
  0x2c   : > { %s957_s16 = sshll.u32 %s1485_s15, 2 }
  0x2d   : > { %s1358_s19 = scalar_lea.vmem %s1468_s1, %s957_s16 }
  0x2f   : > { %v1237_v0 = vmov 0.0  }
  0x30   : > { %324 = vst [vmem:[#allocation2 + $0x30] sm:$0xff] %v1237_v0  ;;  %325 = vst [vmem:[#allocation2] sm:$0xff] %v1237_v0 }
  0x31   : > { %326 = vst [vmem:[#allocation2 + $0x18] sm:$0xff] %v1237_v0  ;;  %327 = vst [vmem:[#allocation2 + $0x10] sm:$0xff] %v1237_v0 }
  0x32   : > { %328 = vst [vmem:[#allocation2 + $0x8] sm:$0xff] %v1237_v0  ;;  %329 = vst [vmem:[#allocation2 + $0x20] sm:$0xff] %v1237_v0 }
  0x33   : > { %330 = vst [vmem:[#allocation2 + $0x28] sm:$0xff] %v1237_v0  ;;  %331 = vst [vmem:[#allocation2 + $0x38] sm:$0xff] %v1237_v0 }
  0x34 PF: > { %v1127_v1 = vld [vmem:[%s1467_s0 + $0x38] sm:$0xff]   ;;  %v1128_v2 = vld [vmem:[%s1467_s0 + $0x30] sm:$0xff]   ;;  %v1129_v3 = vld [vmem:[%s1467_s0 + $0x28] sm:$0xff]   ;;  %p979_p7 = scmp.ne.s32.totalorder %s1223_s26, 2 }
  0x35   : > { %1011 = vmatprep.subr.bf16.mxu0 %v1127_v1  ;;  %v1130_v4 = vld [vmem:[%s1467_s0 + $0x20] sm:$0xff]   ;;  %v1131_v6 = vld [vmem:[%s1467_s0 + $0x18] sm:$0xff]   ;;  %v1132_v7 = vld [vmem:[%s1467_s0 + $0x10] sm:$0xff]   ;;  %s847_s12 = sld [smem:[#allocation3]] (!%p979_p7) }
  0x36   : > { %1012 = vmatpush3.bf16.msra.mxu0 %v1127_v1  ;;  %v1135_v5 = vld [vmem:[%s1358_s19] sm:$0xff]   ;;  %v1133_v8 = vld [vmem:[%s1467_s0 + $0x8] sm:$0xff]   ;;  %v1137_v11 = vld [vmem:[%s1358_s19 + $0x10] sm:$0xff]  }
  0x37   : > { %1013 = vmatprep.subr.bf16.mxu0 %v1128_v2  ;;  %1027 = vmatprep.mubr.bf16.mxu0 %v1135_v5  ;;  %v1134_v9 = vld [vmem:[%s1467_s0] sm:$0xff]   ;;  %v1136_v10 = vld [vmem:[%s1358_s19 + $0x8] sm:$0xff]   ;;  %v1138_v12 = vld [vmem:[%s1358_s19 + $0x18] sm:$0xff]  }
  0x38   : > { %v1139_v13 = vld [vmem:[%s1358_s19 + $0x20] sm:$0xff]   ;;  %v1140_v14 = vld [vmem:[%s1358_s19 + $0x28] sm:$0xff]   ;;  %v1141_v15 = vld [vmem:[%s1358_s19 + $0x30] sm:$0xff]  }
  0x39   : > { %v1142_v16 = vld [vmem:[%s1358_s19 + $0x38] sm:$0xff]   ;;  %v1143_v17 = vld [vmem:[%s1348_s14] sm:$0xff]   ;;  %v1144_v58 = vld [vmem:[%s1348_s14 + $0x8] sm:$0xff]  }
  0x3a   : > { %1014 = vmatpush3.bf16.msra.mxu0 %v1128_v2  ;;  %1059 = vmatprep.mubr.bf16.mxu1 %v1143_v17  ;;  %v1145_v59 = vld [vmem:[%s1348_s14 + $0x10] sm:$0xff]   ;;  %v1146_v60 = vld [vmem:[%s1348_s14 + $0x18] sm:$0xff]   ;;  %v582_v5 = vld [vmem:[#allocation2] sm:$0xff] }
  0x3b   : > { %1015 = vmatprep.subr.bf16.mxu0 %v1129_v3  ;;  %v583_v61 = vld [vmem:[#allocation2 + $0x18] sm:$0xff]  ;;  %v581_v63 = vld [vmem:[#allocation2 + $0x30] sm:$0xff]  ;;  %v586_v17 = vld [vmem:[#allocation2 + $0x20] sm:$0xff] }
  0x3c   : > { %v584_v2 = vld [vmem:[#allocation2 + $0x10] sm:$0xff] }
  0x3e   : > { %1016 = vmatpush3.bf16.msra.mxu0 %v1129_v3 }
  0x3f   : > { %1017 = vmatprep.subr.bf16.mxu0 %v1130_v4 }
  0x42   : > { %1018 = vmatpush3.bf16.msra.mxu0 %v1130_v4 }
  0x43   : > { %1019 = vmatprep.subr.bf16.mxu0 %v1131_v6 }
  0x46   : > { %1020 = vmatpush3.bf16.msra.mxu0 %v1131_v6 }
  0x47   : > { %1021 = vmatprep.subr.bf16.mxu0 %v1132_v7 }
  0x4a   : > { %1022 = vmatpush3.bf16.msra.mxu0 %v1132_v7 }
  0x4b   : > { %1023 = vmatprep.subr.bf16.mxu0 %v1133_v8 }
  0x4e   : > { %1024 = vmatpush3.bf16.msra.mxu0 %v1133_v8  ;;  %v587_v8 = vld [vmem:[#allocation2 + $0x28] sm:$0xff] }
  0x4f   : > { %1025 = vmatprep.subr.bf16.mxu0 %v1134_v9 }
  0x52   : > { %1026 = vmatpush3.bf16.msra.mxu0 %v1134_v9 }
  0x55   : > { %1028 = vmatmul.mubr.bf16.vlgmr.msra.gmra.mxu0 %v1136_v10 }
  0x56   : > { %1031 = vmatprep.mubr.bf16.mxu0 %v1137_v11  ;;  %v585_v11 = vld [vmem:[#allocation2 + $0x8] sm:$0xff] }
  0x5d   : > { %1032 = vmatmul.mubr.bf16.gmra.mxu0 %v1138_v12 }
  0x5e   : > { %1035 = vmatprep.mubr.bf16.mxu0 %v1139_v13 }
  0x65   : > { %1036 = vmatmul.mubr.bf16.gmra.mxu0 %v1140_v14  ;;  %v588_v14 = vld [vmem:[#allocation2 + $0x38] sm:$0xff] }
  0x66   : > { %1039 = vmatprep.mubr.bf16.mxu0 %v1141_v15 }
  0x6d   : > { %1040 = vmatmul.mubr.bf16.gmra.mxu0 %v1142_v16 }
 0x115   : > { %v1029_v18 = vpop.f32.mrf.mxu0 }
 0x116   : > { %v559_v53 = vmax.f32 %v1029_v18, 0.0 }
 0x117   : > { %v494_v19 = vpop.f32.mrf.mxu0 }
 0x118   : > { %v557_v56 = vmax.f32 %v494_v19, 0.0 }
 0x119   : > { %v1030_v20 = vpop.f32.mrf.mxu0 }
 0x11a   : > { %v560_v51 = vmax.f32 %v1030_v20, 0.0 }
 0x11b   : > { %v497_v21 = vpop.f32.mrf.mxu0 }
 0x11c   : > { %v574_v54 = vpack.c.bf16 %v560_v51, %v559_v53  ;;  %v558_v55 = vmax.f32 %v497_v21, 0.0 }
 0x11d   : > { %v1033_v22 = vpop.f32.mrf.mxu0 }
 0x11e   : > { %v563_v47 = vmax.f32 %v1033_v22, 0.0  ;;  %v573_v57 = vpack.c.bf16 %v558_v55, %v557_v56 }
 0x11f   : > { %v510_v23 = vpop.f32.mrf.mxu0 }
 0x120   : > { %v561_v50 = vmax.f32 %v510_v23, 0.0 }
 0x121   : > { %v1034_v24 = vpop.f32.mrf.mxu0 }
 0x122   : > { %v564_v45 = vmax.f32 %v1034_v24, 0.0 }
 0x123   : > { %v513_v25 = vpop.f32.mrf.mxu0 }
 0x124   : > { %v576_v48 = vpack.c.bf16 %v564_v45, %v563_v47  ;;  %v562_v49 = vmax.f32 %v513_v25, 0.0 }
 0x125   : > { %v1037_v26 = vpop.f32.mrf.mxu0 }
 0x126   : > { %v567_v41 = vmax.f32 %v1037_v26, 0.0  ;;  %v575_v52 = vpack.c.bf16 %v562_v49, %v561_v50 }
 0x127   : > { %v526_v27 = vpop.f32.mrf.mxu0 }
 0x128   : > { %v565_v44 = vmax.f32 %v526_v27, 0.0 }
 0x129   : > { %v1038_v28 = vpop.f32.mrf.mxu0 }
 0x12a   : > { %v568_v39 = vmax.f32 %v1038_v28, 0.0 }
 0x12b   : > { %v529_v29 = vpop.f32.mrf.mxu0 }
 0x12c   : > { %v578_v42 = vpack.c.bf16 %v568_v39, %v567_v41  ;;  %v566_v43 = vmax.f32 %v529_v29, 0.0 }
 0x12d   : > { %v1041_v30 = vpop.f32.mrf.mxu0 }
 0x12e   : > { %v571_v33 = vmax.f32 %v1041_v30, 0.0  ;;  %v577_v46 = vpack.c.bf16 %v566_v43, %v565_v44 }
 0x12f   : > { %v542_v31 = vpop.f32.mrf.mxu0 }
 0x130   : > { %v569_v36 = vmax.f32 %v542_v31, 0.0 }
 0x131   : > { %v1042_v32 = vpop.f32.mrf.mxu0 }
 0x132   : > { %v572_v34 = vmax.f32 %v1042_v32, 0.0 }
 0x133   : > { %v545_v35 = vpop.f32.mrf.mxu0 }
 0x134   : > { %v570_v37 = vmax.f32 %v545_v35, 0.0  ;;  %v580_v38 = vpack.c.bf16 %v572_v34, %v571_v33 }
 0x136   : > { %v579_v40 = vpack.c.bf16 %v570_v37, %v569_v36  ;;  %1043 = vmatprep.subr.bf16.mxu1 %v580_v38 }
 0x137   : > { %1044 = vmatpush3.bf16.msra.mxu1 %v580_v38 }
 0x138   : > { %1045 = vmatprep.subr.bf16.mxu1 %v579_v40 }
 0x13b   : > { %1046 = vmatpush3.bf16.msra.mxu1 %v579_v40 }
 0x13c   : > { %1047 = vmatprep.subr.bf16.mxu1 %v578_v42 }
 0x13f   : > { %1048 = vmatpush3.bf16.msra.mxu1 %v578_v42 }
 0x140   : > { %1049 = vmatprep.subr.bf16.mxu1 %v577_v46 }
 0x143   : > { %1050 = vmatpush3.bf16.msra.mxu1 %v577_v46 }
 0x144   : > { %1051 = vmatprep.subr.bf16.mxu1 %v576_v48 }
 0x147   : > { %1052 = vmatpush3.bf16.msra.mxu1 %v576_v48 }
 0x148   : > { %1053 = vmatprep.subr.bf16.mxu1 %v575_v52 }
 0x14b   : > { %1054 = vmatpush3.bf16.msra.mxu1 %v575_v52 }
 0x14c   : > { %1055 = vmatprep.subr.bf16.mxu1 %v574_v54 }
 0x14f   : > { %1056 = vmatpush3.bf16.msra.mxu1 %v574_v54 }
 0x150   : > { %1057 = vmatprep.subr.bf16.mxu1 %v573_v57 }
 0x153   : > { %1058 = vmatpush3.bf16.msra.mxu1 %v573_v57 }
 0x156   : > { %1060 = vmatmul.mubr.bf16.vlgmr.msra.gmra.mxu1 %v1144_v58 }
 0x157   : > { %1063 = vmatprep.mubr.bf16.mxu1 %v1145_v59 }
 0x15e   : > { %1064 = vmatmul.mubr.bf16.gmra.mxu1 %v1146_v60 }
 0x216   : > { %v1061_v62 = vpop.f32.mrf.mxu1 }
 0x217   : > { %v688_v0 = vadd.f32 %v1061_v62, %v583_v61 }
 0x218   : > { %v655_v1 = vpop.f32.mrf.mxu1 }
 0x219   : > { %696 = vst [vmem:[#allocation2 + $0x18] sm:$0xff] %v688_v0  ;;  %v686_v3 = vadd.f32 %v655_v1, %v581_v63 }
 0x21a   : > { %v1062_v4 = vpop.f32.mrf.mxu1 }
 0x21b   : > { %694 = vst [vmem:[#allocation2 + $0x30] sm:$0xff] %v686_v3  ;;  %v689_v6 = vadd.f32 %v1062_v4, %v584_v2 }
 0x21c   : > { %v658_v7 = vpop.f32.mrf.mxu1 }
 0x21d   : > { %697 = vst [vmem:[#allocation2 + $0x10] sm:$0xff] %v689_v6  ;;  %v687_v9 = vadd.f32 %v658_v7, %v582_v5 }
 0x21e   : > { %v1065_v10 = vpop.f32.mrf.mxu1 }
 0x21f   : > { %695 = vst [vmem:[#allocation2] sm:$0xff] %v687_v9  ;;  %v692_v12 = vadd.f32 %v1065_v10, %v587_v8 }
 0x220   : > { %v671_v13 = vpop.f32.mrf.mxu1 }
 0x221   : > { %700 = vst [vmem:[#allocation2 + $0x28] sm:$0xff] %v692_v12  ;;  %v690_v15 = vadd.f32 %v671_v13, %v585_v11 }
 0x222   : > { %v1066_v16 = vpop.f32.mrf.mxu1 }
 0x223   : > { %698 = vst [vmem:[#allocation2 + $0x8] sm:$0xff] %v690_v15  ;;  %v693_v18 = vadd.f32 %v1066_v16, %v588_v14  ;;  %705 = sbr.rel (%p979_p7) target bundleno = 761 (0x2f9), region = 56 }
 0x224   : > { %v674_v19 = vpop.f32.mrf.mxu1 }
 0x225   : > { %701 = vst [vmem:[#allocation2 + $0x38] sm:$0xff] %v693_v18  ;;  %v691_v20 = vadd.f32 %v674_v19, %v586_v17 }
 0x227   : > { %699 = vst [vmem:[#allocation2 + $0x20] sm:$0xff] %v691_v20 }
 0x228   : > { %v716_v21 = vld [vmem:[%s1470_s3 + $0x10] sm:$0xff]  ;;  %v714_v22 = vld [vmem:[%s1470_s3] sm:$0xff]  ;;  %v1238_v23 = vmov 0   ;;  %v717_v24 = vld [vmem:[%s1470_s3 + $0x18] sm:$0xff] }
 0x229   : > { %1148 = vset.pattern.permute.xlu1 %v1238_v23  ;;  %1147 = vset.pattern.permute.xlu0 %v1238_v23  ;;  %v715_v25 = vld [vmem:[%s1470_s3 + $0x8] sm:$0xff]  ;;  %v778_v27 = vld [vmem:[%s1471_s4] sm:$0xff]  ;;  %v780_v28 = vld [vmem:[%s1471_s4 + $0x10] sm:$0xff] }
 0x22a   : > { %734 = vperm.xlu1 %1148, %v716_v21   ;;  %724 = vperm.xlu0 %1147, %v714_v22   ;;  %v779_v26 = vld [vmem:[%s1471_s4 + $0x8] sm:$0xff]  ;;  %v718_v29 = vld [vmem:[%s1470_s3 + $0x20] sm:$0xff]  ;;  %v781_v30 = vld [vmem:[%s1471_s4 + $0x18] sm:$0xff] }
 0x22b   : > { %v719_v31 = vld [vmem:[%s1470_s3 + $0x28] sm:$0xff]  ;;  %v782_v32 = vld [vmem:[%s1471_s4 + $0x20] sm:$0xff]  ;;  %v720_v33 = vld [vmem:[%s1470_s3 + $0x30] sm:$0xff] }
 0x22c   : > { %v783_v34 = vld [vmem:[%s1471_s4 + $0x28] sm:$0xff]  ;;  %v721_v35 = vld [vmem:[%s1470_s3 + $0x38] sm:$0xff]  ;;  %v784_v37 = vld [vmem:[%s1471_s4 + $0x30] sm:$0xff] }
 0x22d   : > { %v785_v36 = vld [vmem:[%s1471_s4 + $0x38] sm:$0xff]  ;;  %v707_v42 = vld [vmem:[#allocation2] sm:$0xff]  ;;  %v706_v43 = vld [vmem:[#allocation2 + $0x30] sm:$0xff] }
 0x22e   : > { %739 = vperm.xlu1 %1148, %v717_v24   ;;  %729 = vperm.xlu0 %1147, %v715_v25   ;;  %v708_v47 = vld [vmem:[#allocation2 + $0x18] sm:$0xff]  ;;  %v709_v49 = vld [vmem:[#allocation2 + $0x10] sm:$0xff]  ;;  %v710_v54 = vld [vmem:[#allocation2 + $0x8] sm:$0xff] }
 0x22f   : > { %v711_v59 = vld [vmem:[#allocation2 + $0x20] sm:$0xff]  ;;  %v712_v5 = vld [vmem:[#allocation2 + $0x28] sm:$0xff]  ;;  %v713_v9 = vld [vmem:[#allocation2 + $0x38] sm:$0xff] }
 0x232   : > { %793 = vperm.xlu1 %1148, %v779_v26   ;;  %788 = vperm.xlu0 %1147, %v778_v27  }
 0x236   : > { %798 = vperm.xlu1 %1148, %v780_v28   ;;  %744 = vperm.xlu0 %1147, %v718_v29  }
 0x23a   : > { %803 = vperm.xlu1 %1148, %v781_v30   ;;  %749 = vperm.xlu0 %1147, %v719_v31  }
 0x23e   : > { %808 = vperm.xlu1 %1148, %v782_v32   ;;  %754 = vperm.xlu0 %1147, %v720_v33  }
 0x242   : > { %813 = vperm.xlu1 %1148, %v783_v34   ;;  %759 = vperm.xlu0 %1147, %v721_v35   ;;  %v848_v34 = vstv %s847_s12 }
 0x246   : > { %823 = vperm.xlu1 %1148, %v785_v36   ;;  %818 = vperm.xlu0 %1147, %v784_v37  }
 0x2a5   : > { %v735_v38 = vpop.permute.xlu1 %734  ;;  %v725_v39 = vpop.permute.xlu0 %724 }
 0x2a6   : > { %v762_v48 = vadd.f32 %v725_v39, %v706_v43  ;;  %v764_v52 = vadd.f32 %v735_v38, %v708_v47 }
 0x2a8   : > { %v770_v55 = vmax.f32 %v762_v48, 0.0  ;;  %v772_v60 = vmax.f32 %v764_v52, 0.0 }
 0x2a9   : > { %v740_v40 = vpop.permute.xlu1 %739  ;;  %v730_v41 = vpop.permute.xlu0 %729 }
 0x2aa   : > { %v763_v46 = vadd.f32 %v730_v41, %v707_v42  ;;  %v765_v56 = vadd.f32 %v740_v40, %v709_v49 }
 0x2ac   : > { %v771_v53 = vmax.f32 %v763_v46, 0.0  ;;  %v773_v0 = vmax.f32 %v765_v56, 0.0 }
 0x2ad   : > { %v794_v44 = vpop.permute.xlu1 %793  ;;  %v789_v45 = vpop.permute.xlu0 %788 }
 0x2ae   : > { %v827_v61 = vmul.f32 %v794_v44, %v771_v53  ;;  %v826_v62 = vmul.f32 %v789_v45, %v770_v55 }
 0x2b0   : > { %v834_v6 = vadd.f32 %v827_v61, %v826_v62 }
 0x2b1   : > { %v799_v50 = vpop.permute.xlu1 %798  ;;  %v745_v51 = vpop.permute.xlu0 %744 }
 0x2b2   : > { %v766_v63 = vadd.f32 %v745_v51, %v710_v54  ;;  %v828_v1 = vmul.f32 %v799_v50, %v772_v60 }
 0x2b4   : > { %v774_v7 = vmax.f32 %v766_v63, 0.0  ;;  %v835_v10 = vadd.f32 %v834_v6, %v828_v1 }
 0x2b5   : > { %v804_v57 = vpop.permute.xlu1 %803  ;;  %v750_v58 = vpop.permute.xlu0 %749 }
 0x2b6   : > { %v767_v2 = vadd.f32 %v750_v58, %v711_v59  ;;  %v829_v8 = vmul.f32 %v804_v57, %v773_v0 }
 0x2b8   : > { %v775_v11 = vmax.f32 %v767_v2, 0.0  ;;  %v836_v16 = vadd.f32 %v835_v10, %v829_v8 }
 0x2b9   : > { %v809_v3 = vpop.permute.xlu1 %808  ;;  %v755_v4 = vpop.permute.xlu0 %754 }
 0x2ba   : > { %v830_v12 = vmul.f32 %v809_v3, %v774_v7  ;;  %v768_v13 = vadd.f32 %v755_v4, %v712_v5 }
 0x2bc   : > { %v837_v19 = vadd.f32 %v836_v16, %v830_v12  ;;  %v776_v20 = vmax.f32 %v768_v13, 0.0 }
 0x2bd   : > { %v814_v14 = vpop.permute.xlu1 %813  ;;  %v760_v15 = vpop.permute.xlu0 %759 }
 0x2be   : > { %v831_v17 = vmul.f32 %v814_v14, %v775_v11  ;;  %v769_v18 = vadd.f32 %v760_v15, %v713_v9 }
 0x2c0   : > { %v777_v21 = vmax.f32 %v769_v18, 0.0  ;;  %v838_v24 = vadd.f32 %v837_v19, %v831_v17 }
 0x2c1   : > { %v824_v22 = vpop.permute.xlu1 %823  ;;  %v819_v23 = vpop.permute.xlu0 %818 }
 0x2c2   : > { %v832_v25 = vmul.f32 %v819_v23, %v776_v20  ;;  %v833_v26 = vmul.f32 %v824_v22, %v777_v21 }
 0x2c4   : > { %v839_v27 = vadd.f32 %v838_v24, %v832_v25 }
 0x2c6   : > { %v840_v28 = vadd.f32 %v839_v27, %v833_v26 }
 0x2c8   : > { %v841_v29 = vrot.slane %v840_v28, 4 }
 0x2ca   : > { %v842_v30 = vadd.f32 %v841_v29, %v840_v28 }
 0x2cc   : > { %v843_v31 = vrot.slane %v842_v30, 2 }
 0x2ce   : > { %v844_v32 = vadd.f32 %v843_v31, %v842_v30 }
 0x2d0   : > { %v845_v33 = vrot.slane %v844_v32, 1 }
 0x2d2   : > { %v846_v35 = vadd.f32 %v845_v33, %v844_v32 }
 0x2d4   : > { %v849_v36 = vadd.f32 %v848_v34, %v846_v35 }
 0x2d6   : > { %v850_v37 = vsub.f32 0.0, %v849_v36 }
 0x2d8   : > { %v851_v38 = vmul.f32 1.442695, %v850_v37 }
 0x2da   : > { %1149 = vpow2.f32 %v851_v38 }
 0x2e7   : > { %v1150_v39 = vpop.eup %1149 }
 0x2e8   : > { %v853_v40 = vadd.f32 1.0, %v1150_v39 }
 0x2ea   : > { %1151 = vrcp.f32 %v853_v40 }
 0x2f7   : > { %v1152_v41 = vpop.eup %1151 }
 0x2f8   : > { %856 = vst [vmem:[%s1473_s6] sm:$0x1] %v1152_v41 }
 0x2f9 PF: > { %s20_s28 = sadd.s32 1, %s1231_s28   ;;  %s1477_s23 = smov %s1215_s24 }
 0x2fa   : > { %p17_p10 = scmp.ge.s32.totalorder %s20_s28, 5   ;;  %s1478_s24 = smov %s1219_s25 }
 0x2fb   : > { %s1479_s25 = smov %s1326_s10  ;;  %s1480_s26 = smov %s1227_s27 }
 0x2fc   : > { %s1481_s27 = smov %s1483_s29  ;;  %19 = sbr.rel (!%p17_p10) target bundleno = 6 (0x6), region = 98 }
 0x301   :  { %874 = vsyncpa [#allocation5], 1 }
 0x302   :  { %876 = vsyncpa [#allocation5 + $0x1], 1 }

</bundles_post_ra>
